<compile_context>
chip_gen: v7x
topology: tpu7x:2x2x1
jax: 0.10.0
libtpu: 0.0.40
codegen_flags: <defaults>
</compile_context>

<pallas_src>
import jax
import jax.numpy as jnp
from jax.experimental import pallas as pl
from jax.experimental.pallas import tpu as pltpu

_LANE = 128
# (x-in + x-out) x double-buffer x block bytes must stay under the scoped-VMEM
# limit on every generation (v5e's 16 MiB default is the smallest); gamma's
# (rows, 1) block is negligible and ignored in the budget.
_VMEM_BUDGET_BYTES = 12 * 1024 * 1024
_MAX_TILE_LANES = 32 * 1024     # ~1 MiB/block at 8 f32 rows; amortises step cost
_VMEM_LIMIT_BYTES = 32 * 1024 * 1024
# Below this size a plain fused XLA multiply beats the pallas_call launch cost.
_MIN_PALLAS_BYTES = 256 * 1024


def _pick_tile_hw(rows, cols, itemsize, max_tile_lanes):
    """Largest lane-dense tile that divides cols and fits the VMEM budget.

    Returns None when no safe Pallas tiling exists (caller falls back to XLA).
    """
    per_lane_bytes = 4 * rows * itemsize            # in + out, double-buffered
    max_lanes = max(_LANE, _VMEM_BUDGET_BYTES // per_lane_bytes)
    max_lanes = min(max_lanes, max_tile_lanes)
    if cols <= max_lanes:
        return cols                                  # single full-width block
    if cols % _LANE != 0:
        # TODO(synk): pad odd spatial widths to a multiple of 128 instead of
        # falling back to the XLA path for very large, non-aligned inputs.
        return None
    t = (max_lanes // _LANE) * _LANE
    while t >= _LANE:
        if cols % t == 0:
            return t
        t -= _LANE
    return None


def _fused_rescale_kernel(g_ref, x_ref, o_ref):
    # (x / gamma) * gamma per row; gamma is a (rows, 1) column broadcast over
    # the lane axis. Matches torch's sequential divide-then-multiply exactly.
    g = g_ref[...]                                   # (rows, 1)
    o_ref[...] = (x_ref[...] / g) * g


def _channel_scale_kernel(g_ref, x_ref, o_ref):
    # x * gamma per row (RescaleByMax.reverse).
    o_ref[...] = x_ref[...] * g_ref[...]             # (rows, 1) broadcast


def _pallas_rowscale(kernel_body, x2, g_col, tile_hw):
    rows, cols = x2.shape
    grid = (cols // tile_hw,)
    return pl.pallas_call(
        kernel_body,
        out_shape=jax.ShapeDtypeStruct((rows, cols), x2.dtype),
        grid_spec=pltpu.PrefetchScalarGridSpec(
            num_scalar_prefetch=0,
            grid=grid,
            in_specs=[
                # gamma: tiny (rows, 1) constant, DMA'd once (constant index
                # map), stays resident across all grid steps.
                pl.BlockSpec((rows, 1), lambda j: (0, 0)),
                # x: full-rows, lane-tiled blocks -> pipelined DMA in/out.
                pl.BlockSpec((rows, tile_hw), lambda j: (0, j)),
            ],
            out_specs=pl.BlockSpec((rows, tile_hw), lambda j: (0, j)),
        ),
        compiler_params=pltpu.CompilerParams(
            dimension_semantics=("parallel",),       # shard tiles over v7x's 2 TCs
            vmem_limit_bytes=_VMEM_LIMIT_BYTES,
        ),
    )(g_col, x2)


def _rowscale(kernel_body, x_nchw, scale_rows, min_pallas_bytes, tile_lanes):
    """Shared driver: returns the Pallas result or None (-> XLA fallback)."""
    n, c, h, w = x_nchw.shape
    rows, cols = n * c, h * w
    nbytes = x_nchw.size * x_nchw.dtype.itemsize
    if nbytes < min_pallas_bytes:
        return None
    tile_hw = _pick_tile_hw(rows, cols, x_nchw.dtype.itemsize,
                            tile_lanes if tile_lanes else _MAX_TILE_LANES)
    if tile_hw is None:
        return None
    x2 = x_nchw.reshape(rows, cols)
    g_col = scale_rows.reshape(rows, 1).astype(x_nchw.dtype)
    out = _pallas_rowscale(kernel_body, x2, g_col, tile_hw)
    return out.reshape(n, c, h, w)


def fused_channel_rescale(x_nchw, gamma_rows, *,
                          min_pallas_bytes=_MIN_PALLAS_BYTES, tile_lanes=None):
    """(x / gamma) * gamma with per-(n, c) gamma, in one fused memory pass."""
    out = _rowscale(_fused_rescale_kernel, x_nchw, gamma_rows,
                    min_pallas_bytes, tile_lanes)
    if out is not None:
        return out
    n, c = x_nchw.shape[:2]
    g = gamma_rows.reshape(n, c, 1, 1).astype(x_nchw.dtype)
    return (x_nchw / g) * g                          # XLA fuses this fine


def channel_scale(x_nchw, scale_rows, *,
                  min_pallas_bytes=_MIN_PALLAS_BYTES, tile_lanes=None):
    """x * scale with per-(n, c) scale, broadcast over (H, W)."""
    out = _rowscale(_channel_scale_kernel, x_nchw, scale_rows,
                    min_pallas_bytes, tile_lanes)
    if out is not None:
        return out
    n, c = x_nchw.shape[:2]
    return x_nchw * scale_rows.reshape(n, c, 1, 1).astype(x_nchw.dtype)


class RescaleByMaxPallas:
    """Port of RescaleByMax; only .reverse() is exercised on the eval path."""

    def __init__(self, slack=1e-06):
        self.slack = slack

    def forward(self, data):
        # Tiny reduction + divide: not on the hot path, leave it to XLA.
        gamma = jnp.max(jnp.abs(data), axis=(2, 3), keepdims=True) + self.slack
        return data / gamma, gamma

    def reverse(self, data, gamma, *, min_pallas_bytes=_MIN_PALLAS_BYTES,
                tile_lanes=None):
        n, c, _, _ = data.shape
        gamma_rows = jnp.broadcast_to(gamma, (n, c, 1, 1)).reshape(n * c)
        return channel_scale(data, gamma_rows,
                             min_pallas_bytes=min_pallas_bytes,
                             tile_lanes=tile_lanes)


class RIMfastMRIPallas:
    """JAX/Pallas port of RIMfastMRI.forward (eval mode: accumulate_eta=False)."""

    def __init__(self, n_steps=8, coil_sum_method="rss", training=False):
        self.n_steps = n_steps
        self.coil_sum_method = coil_sum_method
        self.training = training
        self.preprocessor = RescaleByMaxPallas()
        # gamma = torch.Tensor([[[[150.]], [[150.]], [[1000.]], [[150.]]]])
        self._gamma_c = jnp.array([150.0, 150.0, 1000.0, 150.0], dtype=jnp.float32)

    def __call__(self, y, y_ksp, mask_subsampling, mask_brain, TEs,
                 sense=None, metadata=None, *,
                 min_pallas_bytes=_MIN_PALLAS_BYTES, tile_lanes=None):
        n, c, h, w = y.shape
        assert c == self._gamma_c.shape[0], "gamma is hard-coded for 4 channels"
        gamma_rows = jnp.tile(self._gamma_c, n)      # per-(n, c) row scale

        # TODO(synk): inner RIM model (self.model.forward over n_steps, using
        # y_ksp / masks / TEs / sense) is not defined in the reference module;
        # treated as an identity passthrough (hx = None).  Once a real RIM is
        # plugged in, split the scale/unscale around it (channel_scale + the
        # divide), instead of the fused single-pass kernel below.
        del y_ksp, mask_subsampling, mask_brain, TEs, sense, metadata

        # Fused eval path: (y / gamma) -> [identity RIM] -> (eta * gamma)
        # in a single Pallas pass (one HBM read + one HBM write).
        eta = fused_channel_rescale(y, gamma_rows,
                                    min_pallas_bytes=min_pallas_bytes,
                                    tile_lanes=tile_lanes)
        return eta


if __name__ == "__main__":
    key = jax.random.PRNGKey(0)
    k1, k2 = jax.random.split(key)

    N, C, H, W = 2, 4, 16, 16
    y = jax.random.normal(k1, (N, C, H, W), dtype=jnp.float32)
    y_ksp = jax.random.normal(k2, (N, C, H, W), dtype=jnp.float32)
    mask_subsampling = jnp.ones((N, 1, H, W), dtype=jnp.float32)
    mask_brain = jnp.ones((N, 1, H, W), dtype=jnp.float32)
    TEs = jnp.linspace(0.01, 0.08, C, dtype=jnp.float32)

    model = RIMfastMRIPallas(n_steps=8, training=False)

    # min_pallas_bytes=0 forces the Pallas path even at this tiny test size
    # (the default guard hands KB-scale tensors to plain fused XLA instead).
    out = model(y, y_ksp, mask_subsampling, mask_brain, TEs, min_pallas_bytes=0)
    out = jax.block_until_ready(out)
    assert out.shape == (N, C, H, W)
    # Identity-RIM placeholder: divide-then-multiply by gamma round-trips.
    assert jnp.max(jnp.abs(out - y)) < 1e-4

    # Larger spatial size with a forced smaller tile exercises the multi-tile,
    # lane-tiled, pipelined grid path (cols = 16384 -> four 4096-lane tiles).
    y2 = jax.random.normal(k2, (N, C, 128, 128), dtype=jnp.float32)
    out2 = model(y2, None, None, None, TEs, min_pallas_bytes=0, tile_lanes=4096)
    out2 = jax.block_until_ready(out2)
    assert out2.shape == y2.shape
    assert jnp.max(jnp.abs(out2 - y2)) < 1e-4

    # Also exercise RescaleByMax.reverse (multiply-only kernel).
    gamma_max = jnp.max(jnp.abs(y), axis=(2, 3), keepdims=True) + 1e-6
    rec = model.preprocessor.reverse(y / gamma_max, gamma_max, min_pallas_bytes=0)
    rec = jax.block_until_ready(rec)
    assert jnp.max(jnp.abs(rec - y)) < 1e-4

    print("KERNEL_OK")
</pallas_src>

<mosaic_0001>
module attributes {stable_mosaic.version = 11 : i64} {
  func.func @_fused_rescale_kernel(%arg0: i32, %arg1: memref<8x1xf32, #tpu.memory_space<vmem>>, %arg2: memref<8x256xf32, #tpu.memory_space<vmem>>, %arg3: memref<8x256xf32, #tpu.memory_space<vmem>>) attributes {dimension_semantics = [#tpu.dimension_semantics<parallel>], iteration_bounds = array<i64: 1>, scalar_prefetch = 0 : i64, scratch_operands = 0 : i64, tpu.core_type = #tpu.core_type<tc>, window_params = [{pipeline_mode = #tpu.pipeline_mode<synchronous>, transform_indices = @transform_0, window_bounds = array<i64: 8, 1>}, {transform_indices = @transform_1, window_bounds = array<i64: 8, 256>}, {transform_indices = @transform_2, window_bounds = array<i64: 8, 256>}]} {
    %c0 = arith.constant 0 : index
    %c0_0 = arith.constant 0 : index
    %0 = vector.load %arg1[%c0, %c0_0] : memref<8x1xf32, #tpu.memory_space<vmem>>, vector<8x1xf32>
    %c0_1 = arith.constant 0 : index
    %c0_2 = arith.constant 0 : index
    %1 = vector.load %arg2[%c0_1, %c0_2] : memref<8x256xf32, #tpu.memory_space<vmem>>, vector<8x256xf32>
    %2 = vector.broadcast %0 : vector<8x1xf32> to vector<8x256xf32>
    %3 = arith.divf %1, %2 : vector<8x256xf32>
    %4 = vector.broadcast %0 : vector<8x1xf32> to vector<8x256xf32>
    %5 = arith.mulf %3, %4 : vector<8x256xf32>
    %c0_3 = arith.constant 0 : index
    %c0_4 = arith.constant 0 : index
    %6 = vector.load %arg3[%c0_3, %c0_4] : memref<8x256xf32, #tpu.memory_space<vmem>>, vector<8x256xf32>
    tpu.vector_store %arg3[%c0_3, %c0_4], %5 {strides = array<i32>} : memref<8x256xf32, #tpu.memory_space<vmem>>, vector<8x256xf32>,
    return
  }
  func.func @transform_0(%arg0: i32) -> (i32, i32) {
    %c0_i32 = arith.constant 0 : i32
    %c0_i32_0 = arith.constant 0 : i32
    %c0_i32_1 = arith.constant 0 : i32
    return %c0_i32, %c0_i32_0 : i32, i32
  }
  func.func @transform_1(%arg0: i32) -> (i32, i32) {
    %c0_i32 = arith.constant 0 : i32
    %c0_i32_0 = arith.constant 0 : i32
    return %c0_i32, %arg0 : i32, i32
  }
  func.func @transform_2(%arg0: i32) -> (i32, i32) {
    %c0_i32 = arith.constant 0 : i32
    %c0_i32_0 = arith.constant 0 : i32
    return %c0_i32, %arg0 : i32, i32
  }
}

</mosaic_0001>

<bundles_post_ra>
// kernel: tpu_custom_call.1
= control target key start
LH: loop header
LB: loop body
LE: loop exit
PB: predicated region body
PF: predicated region fallthrough
CT: control target
= control target key end

     0   :  { %7 = vsyncpa [#allocation3], 0  ;;  %s153_s0 = inlined_call_operand.vmem [shape: f32[8,1], index: 0, kind: input, shape index: {}]   ;;  %s154_s1 = inlined_call_operand.hbm [shape: f32[8,256], index: 1, kind: input, shape index: {}]   ;;  %s155_s2 = inlined_call_operand.hbm [shape: f32[8,256], index: 2, kind: output, shape index: {}]  }
   0x1   :  { %8 = vsyncpa [#allocation4], 0  ;;  %s108_s9 = smov [#allocation2]   ;;  %s60_s13 = scalar_lea.hbm %s154_s1, 256 }
   0x2   :  { %s17_s10 = sshll.u32 %s108_s9, 4  ;;  %p61_p0 = scmp.ne.s32.totalorder %s154_s1, %s60_s13  ;;  %s18_s10 = int_to_ptr.vmem [resolvable:$true] %s17_s10 }
   0x3   :  { %p64_p1 = scmp.lt.u32.totalorder %s60_s13, %s154_s1 }
   0x5   :  { %p66_p2 = pnand %p64_p1, %p61_p0 }
   0x7   :  { %69 = shalt.err (!%p66_p2)
}
   0x8   :  { %s70_s18 = scalar_lea.vmem %s18_s10, 256  ;;  %p75_p4 = scmp.lt.s32.totalorder %s18_s10, %s18_s10 }
   0x9   :  { %p71_p3 = scmp.ne.s32.totalorder %s18_s10, %s70_s18  ;;  %p76_p5 = scmp.lt.s32.totalorder %s70_s18, %s70_s18 }
   0xb   :  { %p77_p6 = por %p76_p5, %p75_p4 }
   0xd   :  { %p78_p7 = pnand %p77_p6, %p71_p3 }
   0xf   :  { %81 = shalt.err (!%p78_p7)
}
  0x10   :  { %20 = dma.hbm_to_vmem [thread:$0]  %s154_s1, 256, %s18_s10, [#allocation3]  }
  0x11   :  { %104 = dma.done.wait [#allocation3], 256  }
  0x12   :  { %105 = vsyncadd [#allocation3], 4294967040  ;;  %v109_v0 = vmov 0   ;;  %v24_v1 = vld [vmem:[%s153_s0] sm:$0xff]  ;;  %v26_v4 = vld [vmem:[#allocation2 + $0x8] sm:$0xff]  ;;  %s110_s23 = smov [#allocation5]  }
  0x13   :  { %57 = vset.pattern.permute.xlu0 %v109_v0  ;;  %v25_v3 = vld [vmem:[#allocation2] sm:$0xff]  ;;  %s45_s24 = sshll.u32 %s110_s23, 4  ;;  %s46_s24 = int_to_ptr.vmem [resolvable:$true] %s45_s24 }
  0x14   :  { %29 = vperm.xlu0 %57, %v24_v1   ;;  %s82_s1 = scalar_lea.vmem %s46_s24, 256  ;;  %p87_p9 = scmp.lt.s32.totalorder %s46_s24, %s46_s24 }
  0x15   :  { %p83_p8 = scmp.ne.s32.totalorder %s46_s24, %s82_s1  ;;  %p88_p10 = scmp.lt.s32.totalorder %s82_s1, %s82_s1 }
  0x17   :  { %p89_p11 = por %p88_p10, %p87_p9 }
  0x19   :  { %p90_p12 = pnand %p89_p11, %p83_p8 }
  0x93   :  { %v30_v2 = vpop.permute.xlu0 %29 }
  0x94   :  { %58 = vrcp.f32 %v30_v2 }
  0x9e   :  { %v59_v5 = vpop.eup %58 }
  0x9f   :  { %v33_v6 = vmul.f32 %v59_v5, %v25_v3  ;;  %v34_v7 = vmul.f32 %v59_v5, %v26_v4 }
  0xa1   :  { %v35_v8 = vmul.f32 %v33_v6, %v30_v2  ;;  %v36_v9 = vmul.f32 %v34_v7, %v30_v2 }
  0xa3   :  { %37 = vst [vmem:[#allocation5] sm:$0xff] %v35_v8  ;;  %38 = vst [vmem:[#allocation5 + $0x8] sm:$0xff] %v36_v9 }
  0xa4   :  { %93 = shalt.err (!%p90_p12)
}
  0xa5   :  { %s94_s26 = scalar_lea.hbm %s155_s2, 256 }
  0xa6   :  { %p95_p13 = scmp.ne.s32.totalorder %s155_s2, %s94_s26  ;;  %p98_p0 = scmp.lt.u32.totalorder %s94_s26, %s155_s2 }
  0xa8   :  { %p100_p1 = pnand %p98_p0, %p95_p13 }
  0xaa   :  { %103 = shalt.err (!%p100_p1)
}
  0xab   :  { %48 = dma.vmem_to_hbm [thread:$0]  %s46_s24, 256, %s155_s2, [#allocation4]  }
  0xac   :  { %106 = dma.done.wait [#allocation4], 256  }
  0xad   :  { %107 = vsyncadd [#allocation4], 4294967040 }
  0xae   :  { %52 = vsyncpa [#allocation3], 1 }
  0xaf   :  { %53 = vsyncpa [#allocation4], 1 }

</bundles_post_ra>
